<compile_context>
chip_gen: v7x
topology: tpu7x:2x2x1
jax: 0.10.0
libtpu: 0.0.40
codegen_flags: <defaults>
</compile_context>

<pallas_src>
import functools

import jax
import jax.numpy as jnp
from jax.experimental import pallas as pl
from jax.experimental.pallas import tpu as pltpu


def _round_up(x, m):
    return ((x + m - 1) // m) * m


def actor_kernel(x_ref, w1_ref, b1_ref, w2_ref, b2_ref, w3_ref, b3_ref,
                 bounds_ref, out_ref):
    # x tile: (TILE_B, D_in) f32 -> bf16 for the MXU; accumulate in f32.
    x = x_ref[...].astype(jnp.bfloat16)

    # fc1 + relu (elementwise in f32)
    h1 = jnp.dot(x, w1_ref[...], preferred_element_type=jnp.float32)
    h1 = jnp.maximum(h1 + b1_ref[...], 0.0)                    # (TILE_B, H1) f32

    # fc2 + relu
    h2 = jnp.dot(h1.astype(jnp.bfloat16), w2_ref[...],
                 preferred_element_type=jnp.float32)
    h2 = jnp.maximum(h2 + b2_ref[...], 0.0)                    # (TILE_B, H2) f32

    # fc3 + tanh * action_bounds_high (padded lane-dense to A_pad)
    a = jnp.dot(h2.astype(jnp.bfloat16), w3_ref[...],
                preferred_element_type=jnp.float32)
    a = jnp.tanh(a + b3_ref[...]) * bounds_ref[...]            # (TILE_B, A_pad)

    out_ref[...] = a.astype(out_ref.dtype)


@functools.partial(jax.jit, static_argnames=("tile_b",))
def actor_forward(x, w1, b1, w2, b2, w3, b3, bounds, *, tile_b=512):
    """x: (B, obs_dim+goal_dim) f32. Weights stored as (in, out). Returns (B, A) f32."""
    B, D_in = x.shape
    H1 = w1.shape[1]
    H2 = w2.shape[1]
    A = w3.shape[1]

    # ---- layout preparation (done in the wrapper; fuses under jit) ----------
    # Lane-dense output: pad action dim to a multiple of 128.
    A_pad = _round_up(max(A, 128), 128)
    w3p = jnp.zeros((H2, A_pad), w3.dtype).at[:, :A].set(w3)
    b3p = jnp.zeros((1, A_pad), jnp.float32).at[:, :A].set(b3)
    bounds_p = jnp.zeros((1, A_pad), jnp.float32).at[:, :A].set(bounds)

    # bf16 weights so the HBM copies are already half-size and hit the native MXU path.
    w1b = w1.astype(jnp.bfloat16)
    w2b = w2.astype(jnp.bfloat16)
    w3b = w3p.astype(jnp.bfloat16)

    # Batch tiling: sublane-aligned tile, zero-pad batch to a multiple of it.
    tb = min(tile_b, _round_up(B, 8))
    tb = _round_up(tb, 8)
    B_pad = _round_up(B, tb)
    if B_pad != B:
        x = jnp.zeros((B_pad, D_in), x.dtype).at[:B].set(x)
    grid = (B_pad // tb,)

    # Advisory cost estimate so XLA schedules surrounding ops around this kernel.
    flops = 2 * B_pad * (D_in * H1 + H1 * H2 + H2 * A_pad)
    bytes_accessed = (
        B_pad * D_in * 4                      # x (f32 in)
        + (D_in * H1 + H1 * H2 + H2 * A_pad) * 2   # bf16 weights
        + (H1 + H2 + 2 * A_pad) * 4           # f32 biases + bounds
        + B_pad * A_pad * 4                    # f32 out
    )
    cost = pl.CostEstimate(flops=flops,
                           transcendentals=B_pad * A_pad,
                           bytes_accessed=bytes_accessed)

    pinned = lambda shape: pl.BlockSpec(shape, lambda i: (0, 0))

    out = pl.pallas_call(
        actor_kernel,
        out_shape=jax.ShapeDtypeStruct((B_pad, A_pad), jnp.float32),
        grid_spec=pltpu.PrefetchScalarGridSpec(
            num_scalar_prefetch=0,
            grid=grid,
            in_specs=[
                pl.BlockSpec((tb, D_in), lambda i: (i, 0)),   # x: tiled along batch
                pinned((D_in, H1)),                            # W1 (bf16, resident)
                pinned((1, H1)),                               # b1
                pinned((H1, H2)),                              # W2
                pinned((1, H2)),                               # b2
                pinned((H2, A_pad)),                           # W3 (padded)
                pinned((1, A_pad)),                            # b3
                pinned((1, A_pad)),                            # bounds
            ],
            out_specs=pl.BlockSpec((tb, A_pad), lambda i: (i, 0)),
        ),
        compiler_params=pltpu.CompilerParams(
            dimension_semantics=("parallel",)),                # 2 TCs on v7x
        cost_estimate=cost,
    )(x, w1b, b1, w2b, b2, w3b, b3p, bounds_p)

    return out[:B, :A]


def init_actor_params(key, obs_dim, action_dim, goal_dim,
                      hidden_1=256, hidden_2=256, action_bounds_high=1.0):
    """Deterministic synthetic params. Weights stored as (in, out)."""
    d_in = obs_dim + goal_dim
    k1, k2, k3, k4, k5, k6 = jax.random.split(key, 6)

    def linear_init(kw, kb, fan_in, fan_out):
        # mimic nn.Linear's uniform(-1/sqrt(fan_in), 1/sqrt(fan_in)) init
        bound = 1.0 / jnp.sqrt(jnp.float32(fan_in))
        w = jax.random.uniform(kw, (fan_in, fan_out), jnp.float32, -bound, bound)
        b = jax.random.uniform(kb, (1, fan_out), jnp.float32, -bound, bound)
        return w, b

    w1, b1 = linear_init(k1, k2, d_in, hidden_1)
    w2, b2 = linear_init(k3, k4, hidden_1, hidden_2)
    w3, b3 = linear_init(k5, k6, hidden_2, action_dim)
    bounds = jnp.full((1, action_dim), action_bounds_high, jnp.float32)
    return w1, b1, w2, b2, w3, b3, bounds


def actor_ref(x, w1, b1, w2, b2, w3, b3, bounds):
    h1 = jax.nn.relu(x @ w1 + b1)
    h2 = jax.nn.relu(h1 @ w2 + b2)
    return jnp.tanh(h2 @ w3 + b3) * bounds


if __name__ == "__main__":
    obs_dim, goal_dim, action_dim = 24, 8, 8
    hidden_1 = hidden_2 = 256
    batch = 8

    key = jax.random.PRNGKey(0)
    kx, kp = jax.random.split(key)

    params = init_actor_params(kp, obs_dim, action_dim, goal_dim,
                               hidden_1, hidden_2, action_bounds_high=2.0)
    x = jax.random.normal(kx, (batch, obs_dim + goal_dim), jnp.float32)

    out = actor_forward(x, *params)
    out = jax.block_until_ready(out)

    ref = actor_ref(x, *params)
    assert out.shape == (batch, action_dim)
    # bf16 matmul operands (f32 accumulate) -> relaxed tolerance vs f32 reference.
    assert jnp.allclose(out, ref, atol=5e-2, rtol=5e-2), (
        f"max diff {jnp.max(jnp.abs(out - ref))}")

    # Also exercise a batch that actually tiles (pipelined, multi-step grid).
    xb = jax.random.normal(kx, (1024 + 40, obs_dim + goal_dim), jnp.float32)
    outb = jax.block_until_ready(actor_forward(xb, *params, tile_b=512))
    refb = actor_ref(xb, *params)
    assert outb.shape == refb.shape
    assert jnp.allclose(outb, refb, atol=5e-2, rtol=5e-2), (
        f"max diff {jnp.max(jnp.abs(outb - refb))}")

    print("KERNEL_OK")
</pallas_src>

<mosaic_0001>
module attributes {stable_mosaic.version = 11 : i64} {
  func.func @actor_kernel(%arg0: i32, %arg1: memref<8x32xf32, #tpu.memory_space<vmem>>, %arg2: memref<32x256xbf16, #tpu.memory_space<vmem>>, %arg3: memref<1x256xf32, #tpu.memory_space<vmem>>, %arg4: memref<256x256xbf16, #tpu.memory_space<vmem>>, %arg5: memref<1x256xf32, #tpu.memory_space<vmem>>, %arg6: memref<256x128xbf16, #tpu.memory_space<vmem>>, %arg7: memref<1x128xf32, #tpu.memory_space<vmem>>, %arg8: memref<1x128xf32, #tpu.memory_space<vmem>>, %arg9: memref<8x128xf32, #tpu.memory_space<vmem>>) attributes {dimension_semantics = [#tpu.dimension_semantics<parallel>], iteration_bounds = array<i64: 1>, scalar_prefetch = 0 : i64, scratch_operands = 0 : i64, tpu.core_type = #tpu.core_type<tc>, window_params = [{transform_indices = @transform_0, window_bounds = array<i64: 8, 32>}, {pipeline_mode = #tpu.pipeline_mode<synchronous>, transform_indices = @transform_1, window_bounds = array<i64: 32, 256>}, {pipeline_mode = #tpu.pipeline_mode<synchronous>, transform_indices = @transform_2, window_bounds = array<i64: 1, 256>}, {pipeline_mode = #tpu.pipeline_mode<synchronous>, transform_indices = @transform_3, window_bounds = array<i64: 256, 256>}, {pipeline_mode = #tpu.pipeline_mode<synchronous>, transform_indices = @transform_4, window_bounds = array<i64: 1, 256>}, {pipeline_mode = #tpu.pipeline_mode<synchronous>, transform_indices = @transform_5, window_bounds = array<i64: 256, 128>}, {pipeline_mode = #tpu.pipeline_mode<synchronous>, transform_indices = @transform_6, window_bounds = array<i64: 1, 128>}, {pipeline_mode = #tpu.pipeline_mode<synchronous>, transform_indices = @transform_7, window_bounds = array<i64: 1, 128>}, {transform_indices = @transform_8, window_bounds = array<i64: 8, 128>}]} {
    %c0 = arith.constant 0 : index
    %c0_0 = arith.constant 0 : index
    %0 = vector.load %arg1[%c0, %c0_0] : memref<8x32xf32, #tpu.memory_space<vmem>>, vector<8x32xf32>
    %1 = arith.truncf %0 : vector<8x32xf32> to vector<8x32xbf16>
    %c0_1 = arith.constant 0 : index
    %c0_2 = arith.constant 0 : index
    %2 = vector.load %arg2[%c0_1, %c0_2] : memref<32x256xbf16, #tpu.memory_space<vmem>>, vector<32x256xbf16>
    %cst = arith.constant dense<0.000000e+00> : vector<8x256xf32>
    %3 = tpu.matmul %1, %2, %cst {dimension_numbers = #tpu.dot_dimension_numbers<[1], [0], [0], [1], [0, 0, 1, 1], [], []>} : vector<8x32xbf16>, vector<32x256xbf16>, vector<8x256xf32> -> vector<8x256xf32>
    %c0_3 = arith.constant 0 : index
    %c0_4 = arith.constant 0 : index
    %4 = vector.load %arg3[%c0_3, %c0_4] : memref<1x256xf32, #tpu.memory_space<vmem>>, vector<1x256xf32>
    %5 = vector.broadcast %4 : vector<1x256xf32> to vector<8x256xf32>
    %6 = arith.addf %3, %5 : vector<8x256xf32>
    %cst_5 = arith.constant 0.000000e+00 : f32
    %7 = vector.broadcast %cst_5 : f32 to vector<8x256xf32>
    %8 = arith.maximumf %6, %7 : vector<8x256xf32>
    %9 = arith.truncf %8 : vector<8x256xf32> to vector<8x256xbf16>
    %c0_6 = arith.constant 0 : index
    %c0_7 = arith.constant 0 : index
    %10 = vector.load %arg4[%c0_6, %c0_7] : memref<256x256xbf16, #tpu.memory_space<vmem>>, vector<256x256xbf16>
    %cst_8 = arith.constant dense<0.000000e+00> : vector<8x256xf32>
    %11 = tpu.matmul %9, %10, %cst_8 {dimension_numbers = #tpu.dot_dimension_numbers<[1], [0], [0], [1], [0, 0, 1, 1], [], []>} : vector<8x256xbf16>, vector<256x256xbf16>, vector<8x256xf32> -> vector<8x256xf32>
    %c0_9 = arith.constant 0 : index
    %c0_10 = arith.constant 0 : index
    %12 = vector.load %arg5[%c0_9, %c0_10] : memref<1x256xf32, #tpu.memory_space<vmem>>, vector<1x256xf32>
    %13 = vector.broadcast %12 : vector<1x256xf32> to vector<8x256xf32>
    %14 = arith.addf %11, %13 : vector<8x256xf32>
    %cst_11 = arith.constant 0.000000e+00 : f32
    %15 = vector.broadcast %cst_11 : f32 to vector<8x256xf32>
    %16 = arith.maximumf %14, %15 : vector<8x256xf32>
    %17 = arith.truncf %16 : vector<8x256xf32> to vector<8x256xbf16>
    %c0_12 = arith.constant 0 : index
    %c0_13 = arith.constant 0 : index
    %18 = vector.load %arg6[%c0_12, %c0_13] : memref<256x128xbf16, #tpu.memory_space<vmem>>, vector<256x128xbf16>
    %cst_14 = arith.constant dense<0.000000e+00> : vector<8x128xf32>
    %19 = tpu.matmul %17, %18, %cst_14 {dimension_numbers = #tpu.dot_dimension_numbers<[1], [0], [0], [1], [0, 0, 1, 1], [], []>} : vector<8x256xbf16>, vector<256x128xbf16>, vector<8x128xf32> -> vector<8x128xf32>
    %c0_15 = arith.constant 0 : index
    %c0_16 = arith.constant 0 : index
    %20 = vector.load %arg7[%c0_15, %c0_16] : memref<1x128xf32, #tpu.memory_space<vmem>>, vector<1x128xf32>
    %21 = vector.broadcast %20 : vector<1x128xf32> to vector<8x128xf32>
    %22 = arith.addf %19, %21 : vector<8x128xf32>
    %23 = math.tanh %22 : vector<8x128xf32>
    %c0_17 = arith.constant 0 : index
    %c0_18 = arith.constant 0 : index
    %24 = vector.load %arg8[%c0_17, %c0_18] : memref<1x128xf32, #tpu.memory_space<vmem>>, vector<1x128xf32>
    %25 = vector.broadcast %24 : vector<1x128xf32> to vector<8x128xf32>
    %26 = arith.mulf %23, %25 : vector<8x128xf32>
    %c0_19 = arith.constant 0 : index
    %c0_20 = arith.constant 0 : index
    %27 = vector.load %arg9[%c0_19, %c0_20] : memref<8x128xf32, #tpu.memory_space<vmem>>, vector<8x128xf32>
    tpu.vector_store %arg9[%c0_19, %c0_20], %26 {strides = array<i32>} : memref<8x128xf32, #tpu.memory_space<vmem>>, vector<8x128xf32>,
    return
  }
  func.func @transform_0(%arg0: i32) -> (i32, i32) {
    %c0_i32 = arith.constant 0 : i32
    %c0_i32_0 = arith.constant 0 : i32
    return %arg0, %c0_i32 : i32, i32
  }
  func.func @transform_1(%arg0: i32) -> (i32, i32) {
    %c0_i32 = arith.constant 0 : i32
    %c0_i32_0 = arith.constant 0 : i32
    %c0_i32_1 = arith.constant 0 : i32
    return %c0_i32, %c0_i32_0 : i32, i32
  }
  func.func @transform_2(%arg0: i32) -> (i32, i32) {
    %c0_i32 = arith.constant 0 : i32
    %c0_i32_0 = arith.constant 0 : i32
    %c0_i32_1 = arith.constant 0 : i32
    return %c0_i32, %c0_i32_0 : i32, i32
  }
  func.func @transform_3(%arg0: i32) -> (i32, i32) {
    %c0_i32 = arith.constant 0 : i32
    %c0_i32_0 = arith.constant 0 : i32
    %c0_i32_1 = arith.constant 0 : i32
    return %c0_i32, %c0_i32_0 : i32, i32
  }
  func.func @transform_4(%arg0: i32) -> (i32, i32) {
    %c0_i32 = arith.constant 0 : i32
    %c0_i32_0 = arith.constant 0 : i32
    %c0_i32_1 = arith.constant 0 : i32
    return %c0_i32, %c0_i32_0 : i32, i32
  }
  func.func @transform_5(%arg0: i32) -> (i32, i32) {
    %c0_i32 = arith.constant 0 : i32
    %c0_i32_0 = arith.constant 0 : i32
    %c0_i32_1 = arith.constant 0 : i32
    return %c0_i32, %c0_i32_0 : i32, i32
  }
  func.func @transform_6(%arg0: i32) -> (i32, i32) {
    %c0_i32 = arith.constant 0 : i32
    %c0_i32_0 = arith.constant 0 : i32
    %c0_i32_1 = arith.constant 0 : i32
    return %c0_i32, %c0_i32_0 : i32, i32
  }
  func.func @transform_7(%arg0: i32) -> (i32, i32) {
    %c0_i32 = arith.constant 0 : i32
    %c0_i32_0 = arith.constant 0 : i32
    %c0_i32_1 = arith.constant 0 : i32
    return %c0_i32, %c0_i32_0 : i32, i32
  }
  func.func @transform_8(%arg0: i32) -> (i32, i32) {
    %c0_i32 = arith.constant 0 : i32
    %c0_i32_0 = arith.constant 0 : i32
    return %arg0, %c0_i32 : i32, i32
  }
}

</mosaic_0001>

<bundles_post_ra>
// kernel: actor_forward.1
= control target key start
LH: loop header
LB: loop body
LE: loop exit
PB: predicated region body
PF: predicated region fallthrough
CT: control target
= control target key end

     0   :  { %v741_v2 = vmov 0   ;;  %vm69_vm0 = vcmask 261120   ;;  %s971_s0 = inlined_call_operand.vmem [shape: f32[8,32], index: 0, kind: input, shape index: {}]   ;;  %s972_s1 = inlined_call_operand.vmem [shape: bf16[32,256], index: 1, kind: input, shape index: {}]   ;;  %s973_s2 = inlined_call_operand.vmem [shape: f32[1,256], index: 2, kind: input, shape index: {}]   ;;  %s974_s3 = inlined_call_operand.vmem [shape: bf16[256,256], index: 3, kind: input, shape index: {}]   ;;  %s975_s4 = inlined_call_operand.vmem [shape: f32[1,256], index: 4, kind: input, shape index: {}]   ;;  %s976_s5 = inlined_call_operand.vmem [shape: bf16[256,128], index: 5, kind: input, shape index: {}]   ;;  %s977_s6 = inlined_call_operand.vmem [shape: f32[1,128], index: 6, kind: input, shape index: {}]   ;;  %s978_s7 = inlined_call_operand.vmem [shape: f32[1,128], index: 7, kind: input, shape index: {}]   ;;  %s979_s8 = inlined_call_operand.hbm [shape: f32[8,128], index: 8, kind: output, shape index: {}]  }
   0x1   :  { %v645_v0 = vld [vmem:[%s972_s1 + $0x4] ss:$8 sps:$4 sm:$0xff]   ;;  %v647_v1 = vld [vmem:[%s972_s1] ss:$8 sps:$4 sm:$0xff]   ;;  %105 = vmatprep.mubr.bf16.mxu0 %v741_v2  ;;  %v648_v3 = vld [vmem:[%s972_s1 + $0x14] ss:$8 sps:$4 sm:$0xff]  }
   0x2   :  { %73 = vmatprep.subr.bf16.mxu0 %v645_v0  ;;  %v650_v4 = vld [vmem:[%s972_s1 + $0x10] ss:$8 sps:$4 sm:$0xff]   ;;  %v31_v5 = vld [vmem:[%s971_s0] sm:$0xff]  ;;  %v654_v8 = vld [vmem:[%s974_s3 + $0x14] ss:$8 sps:$4 sm:$0xff]  }
   0x3   :  { %74 = vmatpush1.bf16.msra.mxu0 %v647_v1  ;;  %v651_v6 = vld [vmem:[%s974_s3 + $0x4] ss:$8 sps:$4 sm:$0xff]   ;;  %v653_v7 = vld [vmem:[%s974_s3] ss:$8 sps:$4 sm:$0xff]   ;;  %v32_v9 = vpack.c.bf16 %v31_v5, %v31_v5  ;;  %v656_v10 = vld [vmem:[%s974_s3 + $0x10] ss:$8 sps:$4 sm:$0xff]  }
   0x4   :  { %75 = vmatprep.subr.bf16.mxu0 %v648_v3  ;;  %322 = vmatprep.subr.bf16.mxu1 %v651_v6  ;;  %v657_v11 = vld [vmem:[%s974_s3 + $0x24] ss:$8 sps:$4 sm:$0xff]   ;;  %v659_v12 = vld [vmem:[%s974_s3 + $0x20] ss:$8 sps:$4 sm:$0xff]   ;;  %v660_v13 = vld [vmem:[%s974_s3 + $0x34] ss:$8 sps:$4 sm:$0xff]  }
   0x5   :  { %323 = vmatpush1.bf16.msra.mxu1 %v653_v7  ;;  %v662_v14 = vld [vmem:[%s974_s3 + $0x30] ss:$8 sps:$4 sm:$0xff]   ;;  %v663_v15 = vld [vmem:[%s974_s3 + $0x44] ss:$8 sps:$4 sm:$0xff]   ;;  %v665_v16 = vld [vmem:[%s974_s3 + $0x40] ss:$8 sps:$4 sm:$0xff]  }
   0x6   :  { %324 = vmatprep.subr.bf16.mxu1 %v654_v8  ;;  %v666_v17 = vld [vmem:[%s974_s3 + $0x54] ss:$8 sps:$4 sm:$0xff]   ;;  %v668_v18 = vld [vmem:[%s974_s3 + $0x50] ss:$8 sps:$4 sm:$0xff]   ;;  %v669_v19 = vld [vmem:[%s974_s3 + $0x64] ss:$8 sps:$4 sm:$0xff]  }
   0x7   :  { %76 = vmatpush1.bf16.msra.mxu0 %v650_v4  ;;  %v671_v20 = vld [vmem:[%s974_s3 + $0x60] ss:$8 sps:$4 sm:$0xff]   ;;  %v672_v21 = vld [vmem:[%s974_s3 + $0x74] ss:$8 sps:$4 sm:$0xff]   ;;  %v674_v22 = vld [vmem:[%s974_s3 + $0x70] ss:$8 sps:$4 sm:$0xff]  }
   0x8   :  { %v675_v23 = vld [vmem:[%s974_s3 + $0x84] ss:$8 sps:$4 sm:$0xff]   ;;  %v677_v24 = vld [vmem:[%s974_s3 + $0x80] ss:$8 sps:$4 sm:$0xff]  }
   0x9   :  { %325 = vmatpush1.bf16.msra.mxu1 %v656_v10 }
   0xa   :  { %570 = vmatmul.mubr.msk.bf16.vlgmr.msra.gmra.mrb[0].mxu0 %vm69_vm0, %v32_v9  ;;  %326 = vmatprep.subr.bf16.mxu1 %v657_v11 }
   0xd   :  { %327 = vmatpush1.bf16.msra.mxu1 %v659_v12 }
   0xe   :  { %328 = vmatprep.subr.bf16.mxu1 %v660_v13 }
  0x11   :  { %329 = vmatpush1.bf16.msra.mxu1 %v662_v14 }
  0x12   :  { %330 = vmatprep.subr.bf16.mxu1 %v663_v15 }
  0x15   :  { %331 = vmatpush1.bf16.msra.mxu1 %v665_v16 }
  0x16   :  { %332 = vmatprep.subr.bf16.mxu1 %v666_v17 }
  0x19   :  { %333 = vmatpush1.bf16.msra.mxu1 %v668_v18 }
  0x1a   :  { %334 = vmatprep.subr.bf16.mxu1 %v669_v19 }
  0x1d   :  { %335 = vmatpush1.bf16.msra.mxu1 %v671_v20 }
  0x1e   :  { %336 = vmatprep.subr.bf16.mxu1 %v672_v21 }
  0x21   :  { %337 = vmatpush1.bf16.msra.mxu1 %v674_v22 }
  0x22   :  { %13 = vsyncpa [#allocation3], 0  ;;  %338 = vmatprep.subr.bf16.mxu1 %v675_v23  ;;  %v678_v25 = vld [vmem:[%s974_s3 + $0x94] ss:$8 sps:$4 sm:$0xff]   ;;  %v680_v26 = vld [vmem:[%s974_s3 + $0x90] ss:$8 sps:$4 sm:$0xff]   ;;  %v39_v51 = vlaneseq }
  0x23   :  { %v681_v27 = vld [vmem:[%s974_s3 + $0xa4] ss:$8 sps:$4 sm:$0xff]   ;;  %v683_v28 = vld [vmem:[%s974_s3 + $0xa0] ss:$8 sps:$4 sm:$0xff]   ;;  %v684_v29 = vld [vmem:[%s974_s3 + $0xb4] ss:$8 sps:$4 sm:$0xff]  }
  0x24   :  { %v686_v30 = vld [vmem:[%s974_s3 + $0xb0] ss:$8 sps:$4 sm:$0xff]   ;;  %v687_v31 = vld [vmem:[%s974_s3 + $0xc4] ss:$8 sps:$4 sm:$0xff]   ;;  %v689_v32 = vld [vmem:[%s974_s3 + $0xc0] ss:$8 sps:$4 sm:$0xff]  }
  0x25   :  { %339 = vmatpush1.bf16.msra.mxu1 %v677_v24  ;;  %v690_v33 = vld [vmem:[%s974_s3 + $0xd4] ss:$8 sps:$4 sm:$0xff]   ;;  %v692_v34 = vld [vmem:[%s974_s3 + $0xd0] ss:$8 sps:$4 sm:$0xff]   ;;  %v693_v35 = vld [vmem:[%s974_s3 + $0xe4] ss:$8 sps:$4 sm:$0xff]  }
  0x26   :  { %340 = vmatprep.subr.bf16.mxu1 %v678_v25  ;;  %v695_v36 = vld [vmem:[%s974_s3 + $0xe0] ss:$8 sps:$4 sm:$0xff]   ;;  %v696_v37 = vld [vmem:[%s974_s3 + $0xf4] ss:$8 sps:$4 sm:$0xff]   ;;  %v698_v38 = vld [vmem:[%s974_s3 + $0xf0] ss:$8 sps:$4 sm:$0xff]  }
  0x27   :  { %v699_v39 = vld [vmem:[%s976_s5 + $0x40] sm:$0xff]   ;;  %v701_v41 = vld [vmem:[%s976_s5 + $0x48] sm:$0xff]   ;;  %v703_v43 = vld [vmem:[%s976_s5 + $0x50] sm:$0xff]   ;;  %v40_v52 = vshrl.u32 %v39_v51, 7  ;;  %s742_s18 = smov [#allocation2]  }
  0x28   :  { %v700_v40 = vld [vmem:[%s976_s5] sm:$0xff]   ;;  %621 = vmatprep.subr.bf16.mxu0 %v699_v39  ;;  %v702_v42 = vld [vmem:[%s976_s5 + $0x8] sm:$0xff]   ;;  %v704_v44 = vld [vmem:[%s976_s5 + $0x10] sm:$0xff]   ;;  %s558_s19 = sshll.u32 %s742_s18, 4  ;;  %s559_s19 = int_to_ptr.vmem [resolvable:$true] %s558_s19 }
  0x29   :  { %341 = vmatpush1.bf16.msra.mxu1 %v680_v26  ;;  %622 = vmatpush3.bf16.msra.mxu0 %v700_v40  ;;  %v705_v45 = vld [vmem:[%s976_s5 + $0x58] sm:$0xff]   ;;  %v707_v47 = vld [vmem:[%s976_s5 + $0x60] sm:$0xff]   ;;  %v709_v49 = vld [vmem:[%s976_s5 + $0x68] sm:$0xff]   ;;  %v41_v53 = vsub.s32 0, %v40_v52  ;;  %v45_v55 = vsub.s32 1, %v40_v52  ;;  %s717_s20 = scalar_lea.vmem %s559_s19, 128  ;;  %p722_p1 = scmp.lt.s32.totalorder %s559_s19, %s559_s19 }
  0x2a   :  { %342 = vmatprep.subr.bf16.mxu1 %v681_v27  ;;  %623 = vmatprep.subr.bf16.mxu0 %v701_v41  ;;  %v706_v46 = vld [vmem:[%s976_s5 + $0x18] sm:$0xff]   ;;  %v708_v48 = vld [vmem:[%s976_s5 + $0x20] sm:$0xff]   ;;  %v710_v50 = vld [vmem:[%s976_s5 + $0x28] sm:$0xff]   ;;  %p718_p0 = scmp.ne.s32.totalorder %s559_s19, %s717_s20  ;;  %p723_p2 = scmp.lt.s32.totalorder %s717_s20, %s717_s20 }
  0x2b   :  { %v37_v54 = vld [vmem:[%s973_s2] sm:$0x3]  ;;  %v711_v4 = vld [vmem:[%s976_s5 + $0x70] sm:$0xff]   ;;  %v713_v6 = vld [vmem:[%s976_s5 + $0x78] sm:$0xff]  }
  0x2c   :  { %v42_v56 = vrot.slane %v37_v54, %v41_v53  ;;  %v46_v57 = vrot.slane %v37_v54, %v45_v55  ;;  %v712_v5 = vld [vmem:[%s976_s5 + $0x30] sm:$0xff]   ;;  %v714_v7 = vld [vmem:[%s976_s5 + $0x38] sm:$0xff]   ;;  %v150_v8 = vld [vmem:[%s975_s4] sm:$0x3]  ;;  %p724_p3 = por %p723_p2, %p722_p1 }
  0x2d   :  { %343 = vmatpush1.bf16.msra.mxu1 %v683_v28  ;;  %624 = vmatpush3.bf16.msra.mxu0 %v702_v42  ;;  %v155_v9 = vrot.slane %v150_v8, %v41_v53  ;;  %v159_v10 = vrot.slane %v150_v8, %v45_v55  ;;  %v603_v22 = vld [vmem:[%s977_s6] ss:$0 sm:$0xff] }
  0x2e   :  { %344 = vmatprep.subr.bf16.mxu1 %v684_v29  ;;  %625 = vmatprep.subr.bf16.mxu0 %v703_v43  ;;  %v620_v28 = vld [vmem:[%s978_s7] ss:$0 sm:$0xff]  ;;  %p725_p4 = pnand %p724_p3, %p718_p0 }
  0x31   :  { %345 = vmatpush1.bf16.msra.mxu1 %v686_v30  ;;  %626 = vmatpush3.bf16.msra.mxu0 %v704_v44 }
  0x32   :  { %346 = vmatprep.subr.bf16.mxu1 %v687_v31  ;;  %627 = vmatprep.subr.bf16.mxu0 %v705_v45 }
  0x35   :  { %347 = vmatpush1.bf16.msra.mxu1 %v689_v32  ;;  %628 = vmatpush3.bf16.msra.mxu0 %v706_v46 }
  0x36   :  { %348 = vmatprep.subr.bf16.mxu1 %v690_v33  ;;  %629 = vmatprep.subr.bf16.mxu0 %v707_v47 }
  0x39   :  { %349 = vmatpush1.bf16.msra.mxu1 %v692_v34  ;;  %630 = vmatpush3.bf16.msra.mxu0 %v708_v48 }
  0x3a   :  { %350 = vmatprep.subr.bf16.mxu1 %v693_v35  ;;  %631 = vmatprep.subr.bf16.mxu0 %v709_v49 }
  0x3d   :  { %351 = vmatpush1.bf16.msra.mxu1 %v695_v36  ;;  %632 = vmatpush3.bf16.msra.mxu0 %v710_v50 }
  0x3e   :  { %352 = vmatprep.subr.bf16.mxu1 %v696_v37  ;;  %633 = vmatprep.subr.bf16.mxu0 %v711_v4 }
  0x41   :  { %353 = vmatpush1.bf16.msra.mxu1 %v698_v38  ;;  %634 = vmatpush3.bf16.msra.mxu0 %v712_v5 }
  0x42   :  { %635 = vmatprep.subr.bf16.mxu0 %v713_v6 }
  0x45   :  { %636 = vmatpush3.bf16.msra.mxu0 %v714_v7 }
  0xdd   :  { %v107_v58 = vpop.f32.mrb[0].mxu0 }
  0xde   :  { %v108_v59 = vadd.f32 %v107_v58, %v42_v56  ;;  %v109_v60 = vpop.f32.mrb[1].mxu0 }
  0xdf   :  { %v110_v61 = vadd.f32 %v109_v60, %v46_v57  ;;  %v111_v62 = vpop.f32.mrb[2].mxu0 }
  0xe0   :  { %v114_v63 = vmax.f32 %v108_v59, 0.0  ;;  %v112_v0 = vpop.f32.mrb[3].mxu0 }
  0xe1   :  { %v115_v1 = vmax.f32 %v110_v61, 0.0 }
  0xe2   :  { %v116_v3 = vpack.c.bf16 %v114_v63, %v114_v63 }
  0xe3   :  { %v117_v2 = vpack.c.bf16 %v115_v1, %v115_v1 }
  0xe5   :  { %354 = vmatprep.mubr.bf16.mxu1 %v117_v2 }
  0xe6   :  { %355 = vmatmul.mubr.bf16.vlgmr.msra.gmra.mrb[0].mxu1 %v116_v3 }
 0x1b9   :  { %v356_v11 = vpop.f32.mrb[0].mxu1 }
 0x1ba   :  { %v357_v12 = vadd.f32 %v356_v11, %v155_v9  ;;  %v358_v13 = vpop.f32.mrb[1].mxu1 }
 0x1bb   :  { %v359_v14 = vadd.f32 %v358_v13, %v159_v10  ;;  %v360_v15 = vpop.f32.mrb[2].mxu1 }
 0x1bc   :  { %v363_v16 = vmax.f32 %v357_v12, 0.0  ;;  %v361_v17 = vpop.f32.mrb[3].mxu1 }
 0x1bd   :  { %v364_v18 = vmax.f32 %v359_v14, 0.0 }
 0x1be   :  { %v365_v20 = vpack.c.bf16 %v363_v16, %v363_v16 }
 0x1bf   :  { %v366_v19 = vpack.c.bf16 %v364_v18, %v364_v18 }
 0x1c1   :  { %534 = vmatprep.mubr.bf16.mxu0 %v366_v19 }
 0x1c2   :  { %535 = vmatmul.mubr.bf16.vlgmr.msra.gmra.mrb[4].mxu0 %v365_v20 }
 0x295   :  { %v637_v21 = vpop.f32.mrb[4].mxu0 }
 0x296   :  { %v638_v23 = vpop.f32.mrb[5].mxu0 }
 0x297   :  { %v639_v24 = vadd.f32 %v638_v23, %v637_v21  ;;  %v640_v25 = vpop.f32.mrb[6].mxu0 }
 0x298   :  { %v641_v26 = vpop.f32.mrb[7].mxu0 }
 0x299   :  { %v537_v27 = vadd.f32 %v639_v24, %v603_v22 }
 0x29b   :  { %715 = vtanh.f32 %v537_v27 }
 0x2a5   :  { %v716_v29 = vpop.eup %715 }
 0x2a6   :  { %v550_v30 = vmul.f32 %v716_v29, %v620_v28 }
 0x2a8   :  { %551 = vst [vmem:[#allocation2] sm:$0xff] %v550_v30 }
 0x2a9   :  { %728 = shalt.err (!%p725_p4)
}
 0x2aa   :  { %s729_s21 = scalar_lea.hbm %s979_s8, 128 }
 0x2ab   :  { %p730_p5 = scmp.ne.s32.totalorder %s979_s8, %s729_s21  ;;  %p733_p6 = scmp.lt.u32.totalorder %s729_s21, %s979_s8 }
 0x2ad   :  { %p735_p7 = pnand %p733_p6, %p730_p5 }
 0x2af   :  { %738 = shalt.err (!%p735_p7)
}
 0x2b0   :  { %561 = dma.vmem_to_hbm [thread:$0]  %s559_s19, 128, %s979_s8, [#allocation3]  }
 0x2b1   :  { %739 = dma.done.wait [#allocation3], 128  }
 0x2b2   :  { %740 = vsyncadd [#allocation3], 4294967168 }
 0x2b3   :  { %565 = vsyncpa [#allocation3], 1 }

</bundles_post_ra>
